<compile_context>
chip_gen: v7x
topology: tpu7x:2x2x1
jax: 0.10.0
libtpu: 0.0.40
codegen_flags: <defaults>
</compile_context>

<pallas_src>
import functools

import jax
import jax.numpy as jnp
from jax import lax
from jax.experimental import pallas as pl
from jax.experimental.pallas import tpu as pltpu

INPUT_DIM = 12
HIDDEN1 = 32
HIDDEN2 = 16
OUTPUT_DIM = 5

_INV_SQRT2 = 0.7071067811865476

# lhs (m, k) x rhs (n, k) -> (m, n): contract both minor dims ("NT" matmul).
_NT_DIMS = (((1,), (1,)), ((), ()))


def _gelu_exact(x):
    # PyTorch nn.GELU() default is the exact (erf-based) GELU.
    return 0.5 * x * (1.0 + lax.erf(x * jnp.float32(_INV_SQRT2)))


def mlp_kernel(x_ref, w1_ref, b1_ref, w2_ref, b2_ref, w3_ref, b3_ref, ot_ref,
               *, chunk, n_chunks):
    # Hoist the (tiny) weight / bias loads out of the batch-chunk loop.
    w1 = w1_ref[...]          # (32, 12)
    w2 = w2_ref[...]          # (16, 32)
    w3 = w3_ref[...]          # (5, 16)
    b1 = b1_ref[...]          # (32, 1)
    b2 = b2_ref[...]          # (16, 1)
    b3 = b3_ref[...]          # (5, 1)

    def compute(off):
        xc = x_ref[pl.ds(off, chunk), :]                        # (chunk, 12)
        # (32,12) x (chunk,12)^T -> (32, chunk): batch lands on the lane axis,
        # so GELU runs on dense vregs and the output store stays lane-dense.
        h1 = lax.dot_general(w1, xc, _NT_DIMS,
                             preferred_element_type=jnp.float32) + b1
        h1 = _gelu_exact(h1)                                    # (32, chunk)
        h2 = jnp.dot(w2, h1, preferred_element_type=jnp.float32) + b2
        h2 = _gelu_exact(h2)                                    # (16, chunk)
        y = jnp.dot(w3, h2, preferred_element_type=jnp.float32) + b3
        ot_ref[:, pl.ds(off, chunk)] = y.astype(ot_ref.dtype)   # (5, chunk), lane-dense

    if n_chunks == 1:
        compute(0)
    else:
        def body(c, carry):
            compute(pl.multiple_of(c * chunk, chunk))
            return carry
        lax.fori_loop(0, n_chunks, body, 0)


def _round_up(x, m):
    return ((x + m - 1) // m) * m


def _block_and_chunk(batch):
    """Pick (block_b, inner chunk, n_chunks) from the static batch size."""
    bb_full = _round_up(max(batch, 1), 128)
    if bb_full <= 4096:
        block_b = bb_full                       # single grid step, whole batch
    else:
        # >= 2 grid steps so v7x's two TensorCores both get work, capped at 8192
        # lanes per step (per-step DMA >> the ~0.35us fixed pipeline overhead).
        block_b = min(8192, _round_up(-(-batch // 2), 128))
    chunk = 256 if block_b % 256 == 0 else 128  # bounded vreg pressure per chunk
    return block_b, chunk, block_b // chunk


@jax.jit
def lipschitz_nn_forward(x, params):
    """Forward pass of LipschitzNN.Net.  x: (B, 12) float32 -> (B, 5) float32."""
    w1, b1, w2, b2, w3, b3 = params
    B = x.shape[0]
    block_b, chunk, n_chunks = _block_and_chunk(B)
    grid = (pl.cdiv(B, block_b),)

    flops = 2 * B * (INPUT_DIM * HIDDEN1 + HIDDEN1 * HIDDEN2 + HIDDEN2 * OUTPUT_DIM)
    transcendentals = B * (HIDDEN1 + HIDDEN2)   # one erf per hidden unit per row
    bytes_accessed = 4 * (
        B * (INPUT_DIM + OUTPUT_DIM)
        + INPUT_DIM * HIDDEN1 + HIDDEN1
        + HIDDEN1 * HIDDEN2 + HIDDEN2
        + HIDDEN2 * OUTPUT_DIM + OUTPUT_DIM
    )

    out_t = pl.pallas_call(
        functools.partial(mlp_kernel, chunk=chunk, n_chunks=n_chunks),
        out_shape=jax.ShapeDtypeStruct((OUTPUT_DIM, B), jnp.float32),
        grid_spec=pltpu.PrefetchScalarGridSpec(
            num_scalar_prefetch=0,
            grid=grid,
            in_specs=[
                pl.BlockSpec((block_b, INPUT_DIM), lambda i: (i, 0)),   # x tile (B-major)
                pl.BlockSpec((HIDDEN1, INPUT_DIM), lambda i: (0, 0)),   # w1 (out,in)
                pl.BlockSpec((HIDDEN1, 1), lambda i: (0, 0)),           # b1 (out,1)
                pl.BlockSpec((HIDDEN2, HIDDEN1), lambda i: (0, 0)),     # w2
                pl.BlockSpec((HIDDEN2, 1), lambda i: (0, 0)),           # b2
                pl.BlockSpec((OUTPUT_DIM, HIDDEN2), lambda i: (0, 0)),  # w3
                pl.BlockSpec((OUTPUT_DIM, 1), lambda i: (0, 0)),        # b3
            ],
            out_specs=pl.BlockSpec((OUTPUT_DIM, block_b), lambda i: (0, i)),
        ),
        compiler_params=pltpu.CompilerParams(
            dimension_semantics=("parallel",),
            vmem_limit_bytes=32 * 1024 * 1024,
        ),
        cost_estimate=pl.CostEstimate(
            flops=flops,
            transcendentals=transcendentals,
            bytes_accessed=bytes_accessed,
        ),
    )(x, w1, b1.reshape(-1, 1), w2, b2.reshape(-1, 1), w3, b3.reshape(-1, 1))

    # (5, B) -> (B, 5) inside the same jit; drop entirely if the consumer can take
    # feature-major output.
    return out_t.T


def init_params(key):
    """Deterministic init matching nn.Linear parameter shapes (out, in) / (out,)."""
    ks = jax.random.split(key, 6)

    def linear_init(kw, kb, fan_in, fan_out):
        bound = 1.0 / jnp.sqrt(fan_in)
        w = jax.random.uniform(kw, (fan_out, fan_in), jnp.float32, -bound, bound)
        b = jax.random.uniform(kb, (fan_out,), jnp.float32, -bound, bound)
        return w, b

    w1, b1 = linear_init(ks[0], ks[1], INPUT_DIM, HIDDEN1)
    w2, b2 = linear_init(ks[2], ks[3], HIDDEN1, HIDDEN2)
    w3, b3 = linear_init(ks[4], ks[5], HIDDEN2, OUTPUT_DIM)
    return (w1, b1, w2, b2, w3, b3)


def reference_forward(x, params):
    w1, b1, w2, b2, w3, b3 = params
    h = jax.nn.gelu(x @ w1.T + b1, approximate=False)
    h = jax.nn.gelu(h @ w2.T + b2, approximate=False)
    return h @ w3.T + b3


# TODO(synk): lip_loss relies on torch.autograd Jacobians + sklearn scaler state; not part of
# the forward pass, so it is not implemented as a kernel.

if __name__ == "__main__":
    key = jax.random.PRNGKey(0)
    k_param, k1, k2, k3 = jax.random.split(key, 4)
    params = init_params(k_param)

    # batch=8   : tiny single block (partial, exercises masking, n_chunks == 1)
    # batch=2000: single grid step, 8 inner 256-lane chunks, ragged tail
    # batch=4100: 2 grid steps (block_b=2176), 128-lane chunks, partial last block
    for kx, batch in ((k1, 8), (k2, 2000), (k3, 4100)):
        x = jax.random.normal(kx, (batch, INPUT_DIM), jnp.float32)
        out = jax.block_until_ready(lipschitz_nn_forward(x, params))
        ref = reference_forward(x, params)
        assert out.shape == (batch, OUTPUT_DIM)
        assert jnp.allclose(out, ref, atol=1e-4, rtol=1e-4), f"mismatch at B={batch}"

    print("KERNEL_OK")
</pallas_src>

<mosaic_0001>
module attributes {stable_mosaic.version = 11 : i64} {
  func.func @mlp_kernel(%arg0: i32, %arg1: memref<128x12xf32, #tpu.memory_space<vmem>>, %arg2: memref<32x12xf32, #tpu.memory_space<vmem>>, %arg3: memref<32x1xf32, #tpu.memory_space<vmem>>, %arg4: memref<16x32xf32, #tpu.memory_space<vmem>>, %arg5: memref<16x1xf32, #tpu.memory_space<vmem>>, %arg6: memref<5x16xf32, #tpu.memory_space<vmem>>, %arg7: memref<5x1xf32, #tpu.memory_space<vmem>>, %arg8: memref<5x128xf32, #tpu.memory_space<vmem>>) attributes {dimension_semantics = [#tpu.dimension_semantics<parallel>], iteration_bounds = array<i64: 1>, scalar_prefetch = 0 : i64, scratch_operands = 0 : i64, tpu.core_type = #tpu.core_type<tc>, window_params = [{transform_indices = @transform_0, window_bounds = array<i64: 128, 12>}, {pipeline_mode = #tpu.pipeline_mode<synchronous>, transform_indices = @transform_1, window_bounds = array<i64: 32, 12>}, {pipeline_mode = #tpu.pipeline_mode<synchronous>, transform_indices = @transform_2, window_bounds = array<i64: 32, 1>}, {pipeline_mode = #tpu.pipeline_mode<synchronous>, transform_indices = @transform_3, window_bounds = array<i64: 16, 32>}, {pipeline_mode = #tpu.pipeline_mode<synchronous>, transform_indices = @transform_4, window_bounds = array<i64: 16, 1>}, {pipeline_mode = #tpu.pipeline_mode<synchronous>, transform_indices = @transform_5, window_bounds = array<i64: 5, 16>}, {pipeline_mode = #tpu.pipeline_mode<synchronous>, transform_indices = @transform_6, window_bounds = array<i64: 5, 1>}, {transform_indices = @transform_7, window_bounds = array<i64: 5, 128>}]} {
    %c0 = arith.constant 0 : index
    %c0_0 = arith.constant 0 : index
    %0 = vector.load %arg2[%c0, %c0_0] : memref<32x12xf32, #tpu.memory_space<vmem>>, vector<32x12xf32>
    %c0_1 = arith.constant 0 : index
    %c0_2 = arith.constant 0 : index
    %1 = vector.load %arg4[%c0_1, %c0_2] : memref<16x32xf32, #tpu.memory_space<vmem>>, vector<16x32xf32>
    %c0_3 = arith.constant 0 : index
    %c0_4 = arith.constant 0 : index
    %2 = vector.load %arg6[%c0_3, %c0_4] : memref<5x16xf32, #tpu.memory_space<vmem>>, vector<5x16xf32>
    %c0_5 = arith.constant 0 : index
    %c0_6 = arith.constant 0 : index
    %3 = vector.load %arg3[%c0_5, %c0_6] : memref<32x1xf32, #tpu.memory_space<vmem>>, vector<32x1xf32>
    %c0_7 = arith.constant 0 : index
    %c0_8 = arith.constant 0 : index
    %4 = vector.load %arg5[%c0_7, %c0_8] : memref<16x1xf32, #tpu.memory_space<vmem>>, vector<16x1xf32>
    %c0_9 = arith.constant 0 : index
    %c0_10 = arith.constant 0 : index
    %5 = vector.load %arg7[%c0_9, %c0_10] : memref<5x1xf32, #tpu.memory_space<vmem>>, vector<5x1xf32>
    %c0_11 = arith.constant 0 : index
    %c0_12 = arith.constant 0 : index
    %6 = vector.load %arg1[%c0_11, %c0_12] : memref<128x12xf32, #tpu.memory_space<vmem>>, vector<128x12xf32>
    %cst = arith.constant dense<0.000000e+00> : vector<32x128xf32>
    %7 = tpu.matmul %0, %6, %cst {dimension_numbers = #tpu.dot_dimension_numbers<[1], [1], [0], [0], [0, 0, 1, 0], [], []>} : vector<32x12xf32>, vector<128x12xf32>, vector<32x128xf32> -> vector<32x128xf32>
    %8 = vector.broadcast %3 : vector<32x1xf32> to vector<32x128xf32>
    %9 = arith.addf %7, %8 : vector<32x128xf32>
    %cst_13 = arith.constant 5.000000e-01 : f32
    %10 = vector.broadcast %cst_13 : f32 to vector<32x128xf32>
    %11 = arith.mulf %10, %9 : vector<32x128xf32>
    %cst_14 = arith.constant 0.707106769 : f32
    %12 = vector.broadcast %cst_14 : f32 to vector<32x128xf32>
    %13 = arith.mulf %9, %12 : vector<32x128xf32>
    %14 = math.erf %13 : vector<32x128xf32>
    %cst_15 = arith.constant 1.000000e+00 : f32
    %15 = vector.broadcast %cst_15 : f32 to vector<32x128xf32>
    %16 = arith.addf %15, %14 : vector<32x128xf32>
    %17 = arith.mulf %11, %16 : vector<32x128xf32>
    %cst_16 = arith.constant dense<0.000000e+00> : vector<16x128xf32>
    %18 = tpu.matmul %1, %17, %cst_16 {dimension_numbers = #tpu.dot_dimension_numbers<[1], [0], [0], [1], [0, 0, 1, 1], [], []>} : vector<16x32xf32>, vector<32x128xf32>, vector<16x128xf32> -> vector<16x128xf32>
    %19 = vector.broadcast %4 : vector<16x1xf32> to vector<16x128xf32>
    %20 = arith.addf %18, %19 : vector<16x128xf32>
    %cst_17 = arith.constant 5.000000e-01 : f32
    %21 = vector.broadcast %cst_17 : f32 to vector<16x128xf32>
    %22 = arith.mulf %21, %20 : vector<16x128xf32>
    %cst_18 = arith.constant 0.707106769 : f32
    %23 = vector.broadcast %cst_18 : f32 to vector<16x128xf32>
    %24 = arith.mulf %20, %23 : vector<16x128xf32>
    %25 = math.erf %24 : vector<16x128xf32>
    %cst_19 = arith.constant 1.000000e+00 : f32
    %26 = vector.broadcast %cst_19 : f32 to vector<16x128xf32>
    %27 = arith.addf %26, %25 : vector<16x128xf32>
    %28 = arith.mulf %22, %27 : vector<16x128xf32>
    %cst_20 = arith.constant dense<0.000000e+00> : vector<5x128xf32>
    %29 = tpu.matmul %2, %28, %cst_20 {dimension_numbers = #tpu.dot_dimension_numbers<[1], [0], [0], [1], [0, 0, 1, 1], [], []>} : vector<5x16xf32>, vector<16x128xf32>, vector<5x128xf32> -> vector<5x128xf32>
    %30 = vector.broadcast %5 : vector<5x1xf32> to vector<5x128xf32>
    %31 = arith.addf %29, %30 : vector<5x128xf32>
    %c0_21 = arith.constant 0 : index
    %c0_22 = arith.constant 0 : index
    %32 = vector.load %arg8[%c0_21, %c0_22] : memref<5x128xf32, #tpu.memory_space<vmem>>, vector<5x128xf32>
    tpu.vector_store %arg8[%c0_21, %c0_22], %31 {strides = array<i32>} : memref<5x128xf32, #tpu.memory_space<vmem>>, vector<5x128xf32>,
    return
  }
  func.func @transform_0(%arg0: i32) -> (i32, i32) {
    %c0_i32 = arith.constant 0 : i32
    %c0_i32_0 = arith.constant 0 : i32
    return %arg0, %c0_i32 : i32, i32
  }
  func.func @transform_1(%arg0: i32) -> (i32, i32) {
    %c0_i32 = arith.constant 0 : i32
    %c0_i32_0 = arith.constant 0 : i32
    %c0_i32_1 = arith.constant 0 : i32
    return %c0_i32, %c0_i32_0 : i32, i32
  }
  func.func @transform_2(%arg0: i32) -> (i32, i32) {
    %c0_i32 = arith.constant 0 : i32
    %c0_i32_0 = arith.constant 0 : i32
    %c0_i32_1 = arith.constant 0 : i32
    return %c0_i32, %c0_i32_0 : i32, i32
  }
  func.func @transform_3(%arg0: i32) -> (i32, i32) {
    %c0_i32 = arith.constant 0 : i32
    %c0_i32_0 = arith.constant 0 : i32
    %c0_i32_1 = arith.constant 0 : i32
    return %c0_i32, %c0_i32_0 : i32, i32
  }
  func.func @transform_4(%arg0: i32) -> (i32, i32) {
    %c0_i32 = arith.constant 0 : i32
    %c0_i32_0 = arith.constant 0 : i32
    %c0_i32_1 = arith.constant 0 : i32
    return %c0_i32, %c0_i32_0 : i32, i32
  }
  func.func @transform_5(%arg0: i32) -> (i32, i32) {
    %c0_i32 = arith.constant 0 : i32
    %c0_i32_0 = arith.constant 0 : i32
    %c0_i32_1 = arith.constant 0 : i32
    return %c0_i32, %c0_i32_0 : i32, i32
  }
  func.func @transform_6(%arg0: i32) -> (i32, i32) {
    %c0_i32 = arith.constant 0 : i32
    %c0_i32_0 = arith.constant 0 : i32
    %c0_i32_1 = arith.constant 0 : i32
    return %c0_i32, %c0_i32_0 : i32, i32
  }
  func.func @transform_7(%arg0: i32) -> (i32, i32) {
    %c0_i32 = arith.constant 0 : i32
    %c0_i32_0 = arith.constant 0 : i32
    return %c0_i32, %arg0 : i32, i32
  }
}

</mosaic_0001>

<bundles_post_ra>
// kernel: lipschitz_nn_forward.1
= control target key start
LH: loop header
LB: loop body
LE: loop exit
PB: predicated region body
PF: predicated region fallthrough
CT: control target
= control target key end

     0   :  { %vm76_vm0 = vcmask 97280   ;;  %v613_v3 = vmov 0   ;;  %vm252_vm2 = vcmask 261120   ;;  %vm615_vm3 = vmmov 0   ;;  %s794_s0 = inlined_call_operand.vmem [shape: f32[8,12], index: 0, kind: input, shape index: {}]   ;;  %s795_s1 = inlined_call_operand.vmem [shape: f32[32,12], index: 1, kind: input, shape index: {}]   ;;  %s796_s2 = inlined_call_operand.vmem [shape: f32[32,1], index: 2, kind: input, shape index: {}]   ;;  %s797_s4 = inlined_call_operand.vmem [shape: f32[16,1], index: 4, kind: input, shape index: {}]   ;;  %s798_s6 = inlined_call_operand.vmem [shape: f32[5,1], index: 6, kind: input, shape index: {}]   ;;  %s799_s3 = inlined_call_operand.vmem [shape: f32[16,32], index: 3, kind: input, shape index: {}]   ;;  %s800_s5 = inlined_call_operand.vmem [shape: f32[5,16], index: 5, kind: input, shape index: {}]   ;;  %s801_s7 = inlined_call_operand.vmem [shape: f32[5,8], index: 7, kind: output, shape index: {}]  }
   0x1   :  { %v40_v0 = vld [vmem:[%s794_s0] sm:$0xff]  ;;  %v41_v1 = vld [vmem:[%s794_s0 + $0x8] sm:$0xff]  ;;  %vm665_vm1 = vmpackc.low %vm76_vm0, %vm76_vm0  ;;  %599 = vset.pattern.permute.xlu0 %v613_v3  ;;  %600 = vset.pattern.permute.xlu1 %v613_v3  ;;  %vm349_vm4 = vcmask 130048  }
   0x2   :  { %v536_v4 = vpack.c.bf16 %v41_v1, %v40_v0  ;;  %v42_v5 = vld [vmem:[%s794_s0 + $0x10] sm:$0xff]  ;;  %v43_v6 = vld [vmem:[%s794_s0 + $0x18] sm:$0xff]  ;;  %v26_v8 = vld [vmem:[%s795_s1] sm:$0xff] }
   0x3   :  { %v542_v7 = vpack.c.bf16 %v43_v6, %v42_v5  ;;  %v44_v9 = vld [vmem:[%s794_s0 + $0x20] sm:$0xff]  ;;  %v45_v10 = vld [vmem:[%s794_s0 + $0x28] sm:$0xff]  ;;  %512 = vmatprep.mubr.msk.f32.mxu0 %vm76_vm0, %v26_v8  ;;  %v35_v12 = vld [vmem:[%s796_s2 + $0x10] sm:$0xff] }
   0x4   :  { %538 = vmatprep.subr.msk.bf16.mxu0 %vm665_vm1, %v536_v4  ;;  %v33_v11 = vld [vmem:[%s796_s2] sm:$0xff]  ;;  %68 = vperm.xlu1 %600, %v35_v12   ;;  %v548_v13 = vpack.c.bf16 %v45_v10, %v44_v9  ;;  %v34_v14 = vld [vmem:[%s796_s2 + $0x8] sm:$0xff]  ;;  %v36_v15 = vld [vmem:[%s796_s2 + $0x18] sm:$0xff]  ;;  %v614_v9 = vmov 0.0|0.0   ;;  %v616_v10 = vmov 0.0  }
   0x5   :  { %541 = vmatpush3.bf16.xpose.msk.msra.mxu0 %vm665_vm1, %v536_v4  ;;  %58 = vperm.xlu0 %599, %v33_v11   ;;  %v37_v16 = vld [vmem:[%s797_s4] sm:$0xff]  ;;  %v46_v17 = vld [vmem:[%s794_s0 + $0x30] sm:$0xff]  ;;  %v47_v18 = vld [vmem:[%s794_s0 + $0x38] sm:$0xff] }
   0x6   :  { %544 = vmatprep.subr.msk.bf16.mxu0 %vm665_vm1, %v542_v7  ;;  %v38_v19 = vld [vmem:[%s797_s4 + $0x8] sm:$0xff]  ;;  %v554_v20 = vpack.c.bf16 %v47_v18, %v46_v17  ;;  %v39_v21 = vld [vmem:[%s798_s6] sm:$0x1f]  ;;  %v50_v25 = vld [vmem:[%s794_s0 + $0x50] sm:$0xff] }
   0x7   :  { %v48_v22 = vld [vmem:[%s794_s0 + $0x40] sm:$0xff]  ;;  %v49_v23 = vld [vmem:[%s794_s0 + $0x48] sm:$0xff]  ;;  %v51_v26 = vld [vmem:[%s794_s0 + $0x58] sm:$0xff] }
   0x8   :  { %73 = vperm.xlu1 %600, %v36_v15   ;;  %v560_v24 = vpack.c.bf16 %v49_v23, %v48_v22  ;;  %v566_v27 = vpack.c.bf16 %v51_v26, %v50_v25  ;;  %v52_v28 = vld [vmem:[%s794_s0 + $0x60] sm:$0xff]  ;;  %v53_v29 = vld [vmem:[%s794_s0 + $0x68] sm:$0xff]  ;;  %v54_v31 = vld [vmem:[%s794_s0 + $0x70] sm:$0xff] }
   0x9   :  { %63 = vperm.xlu0 %599, %v34_v14   ;;  %v572_v30 = vpack.c.bf16 %v53_v29, %v52_v28  ;;  %v55_v32 = vld [vmem:[%s794_s0 + $0x78] sm:$0xff]  ;;  %v27_v34 = vld [vmem:[%s795_s1 + $0x8] sm:$0xff]  ;;  %v28_v35 = vld [vmem:[%s795_s1 + $0x10] sm:$0xff] }
   0xa   :  { %v578_v33 = vpack.c.bf16 %v55_v32, %v54_v31  ;;  %v29_v36 = vld [vmem:[%s795_s1 + $0x18] sm:$0xff]  ;;  %v30_v37 = vld [vmem:[%s799_s3] sm:$0xff]  ;;  %v31_v8 = vld [vmem:[%s799_s3 + $0x8] sm:$0xff] }
   0xb   :  { %526 = vmatprep.mubr.msk.f32.mxu1 %vm252_vm2, %v30_v37  ;;  %v32_v28 = vld [vmem:[%s800_s5] sm:$0x1f] }
   0xc   :  { %249 = vperm.xlu1 %600, %v38_v19  }
   0xd   :  { %547 = vmatpush3.bf16.xpose.msk.msra.mxu0 %vm665_vm1, %v542_v7  ;;  %244 = vperm.xlu0 %599, %v37_v16  }
   0xe   :  { %550 = vmatprep.subr.msk.bf16.mxu0 %vm665_vm1, %v548_v13 }
  0x11   :  { %346 = vperm.xlu0 %599, %v39_v21  }
  0x15   :  { %553 = vmatpush3.bf16.xpose.msk.msra.mxu0 %vm665_vm1, %v548_v13 }
  0x16   :  { %556 = vmatprep.subr.msk.bf16.mxu0 %vm665_vm1, %v554_v20 }
  0x1d   :  { %559 = vmatpush3.bf16.xpose.msk.msra.mxu0 %vm665_vm1, %v554_v20 }
  0x1e   :  { %562 = vmatprep.subr.msk.bf16.mxu0 %vm665_vm1, %v560_v24 }
  0x25   :  { %565 = vmatpush3.bf16.xpose.msk.msra.mxu0 %vm665_vm1, %v560_v24 }
  0x26   :  { %568 = vmatprep.subr.msk.bf16.mxu0 %vm665_vm1, %v566_v27 }
  0x2d   :  { %571 = vmatpush3.bf16.xpose.msk.msra.mxu0 %vm665_vm1, %v566_v27 }
  0x2e   :  { %574 = vmatprep.subr.msk.bf16.mxu0 %vm665_vm1, %v572_v30 }
  0x35   :  { %577 = vmatpush3.bf16.xpose.msk.msra.mxu0 %vm665_vm1, %v572_v30 }
  0x36   :  { %580 = vmatprep.subr.msk.bf16.mxu0 %vm665_vm1, %v578_v33 }
  0x3d   :  { %583 = vmatpush3.bf16.xpose.msk.msra.mxu0 %vm665_vm1, %v578_v33 }
  0x44   :  { %513 = vmatmul.mubr.msk.f32.vlgmr.msra.gmra.mrb[0].mxu0 %vm76_vm0, %v27_v34 }
  0x45   :  { %515 = vmatprep.mubr.msk.f32.mxu0 %vm76_vm0, %v28_v35 }
  0x48   :  { %516 = vmatmul.mubr.msk.f32.gmra.mrb[2].mxu0 %vm76_vm0, %v29_v36 }
  0x83   :  { %v69_v39 = vpop.permute.xlu1 %68 }
  0x84   :  { %v59_v38 = vpop.permute.xlu0 %58 }
  0x87   :  { %v74_v46 = vpop.permute.xlu1 %73 }
  0x88   :  { %v64_v40 = vpop.permute.xlu0 %63 }
  0x8b   :  { %v250_v11 = vpop.permute.xlu1 %249 }
  0x8c   :  { %v245_v13 = vpop.permute.xlu0 %244 }
  0x90   :  { %v347_v29 = vpop.permute.xlu0 %346 }
 0x117   :  { %v514_v41 = vpop.f32.mrb[0].mxu0 }
 0x118   :  { %v209_v42 = vadd.f32 %v514_v41, %v64_v40  ;;  %v203_v43 = vpop.f32.mrb[1].mxu0 }
 0x119   :  { %v204_v44 = vadd.f32 %v203_v43, %v59_v38 }
 0x11a   :  { %v227_v45 = vmul.f32 0.70710677, %v209_v42  ;;  %v223_v56 = vmul.f32 0.5, %v209_v42 }
 0x11b   :  { %v226_v47 = vmul.f32 0.70710677, %v204_v44  ;;  %v517_v48 = vpop.f32.mrb[2].mxu0  ;;  %v222_v58 = vmul.f32 0.5, %v204_v44 }
 0x11c   :  { %601 = verf.f32 %v227_v45  ;;  %v219_v49 = vadd.f32 %v517_v48, %v74_v46  ;;  %v213_v50 = vpop.f32.mrb[3].mxu0 }
 0x11d   :  { %603 = verf.f32 %v226_v47  ;;  %v214_v51 = vadd.f32 %v213_v50, %v69_v39 }
 0x11e   :  { %v229_v52 = vmul.f32 0.70710677, %v219_v49  ;;  %v225_v0 = vmul.f32 0.5, %v219_v49 }
 0x11f   :  { %v228_v53 = vmul.f32 0.70710677, %v214_v51  ;;  %v224_v2 = vmul.f32 0.5, %v214_v51 }
 0x120   :  { %605 = verf.f32 %v229_v52 }
 0x121   :  { %607 = verf.f32 %v228_v53 }
 0x126   :  { %v602_v54 = vpop.eup %601 }
 0x127   :  { %v604_v55 = vpop.eup %603  ;;  %v235_v57 = vadd.f32 1.0, %v602_v54 }
 0x128   :  { %v234_v59 = vadd.f32 1.0, %v604_v55 }
 0x129   :  { %v239_v60 = vmul.f32 %v235_v57, %v223_v56 }
 0x12a   :  { %v606_v61 = vpop.eup %605  ;;  %v238_v62 = vmul.f32 %v234_v59, %v222_v58 }
 0x12b   :  { %v608_v63 = vpop.eup %607  ;;  %v237_v1 = vadd.f32 1.0, %v606_v61 }
 0x12c   :  { %v236_v3 = vadd.f32 1.0, %v608_v63  ;;  %v584_v4 = vpack.c.bf16 %v239_v60, %v238_v62 }
 0x12d   :  { %v241_v5 = vmul.f32 %v237_v1, %v225_v0 }
 0x12e   :  { %v240_v6 = vmul.f32 %v236_v3, %v224_v2  ;;  %585 = vmatprep.subr.bf16.mxu1 %v584_v4 }
 0x12f   :  { %587 = vmatpush3.bf16.msra.mxu1 %v584_v4 }
 0x130   :  { %v588_v7 = vpack.c.bf16 %v241_v5, %v240_v6 }
 0x132   :  { %589 = vmatprep.subr.bf16.mxu1 %v588_v7 }
 0x133   :  { %591 = vmatpush3.bf16.msra.mxu1 %v588_v7 }
 0x134   :  { %592 = vmatprep.subr.bf16.mxu1 %v614_v9 }
 0x136   :  { %527 = vmatmul.mubr.msk.f32.vlgmr.msra.gmra.mrb[0].mxu1 %vm252_vm2, %v31_v8 }
 0x137   :  { %533 = vmatprep.mubr.msk.f32.mxu1 %vm615_vm3, %v616_v10 }
 0x209   :  { %v528_v12 = vpop.f32.mrb[0].mxu1 }
 0x20a   :  { %v331_v14 = vadd.f32 %v528_v12, %v250_v11  ;;  %v325_v15 = vpop.f32.mrb[1].mxu1 }
 0x20b   :  { %v326_v16 = vadd.f32 %v325_v15, %v245_v13 }
 0x20c   :  { %v337_v17 = vmul.f32 0.70710677, %v331_v14  ;;  %v335_v21 = vmul.f32 0.5, %v331_v14 }
 0x20d   :  { %v336_v18 = vmul.f32 0.70710677, %v326_v16  ;;  %v334_v23 = vmul.f32 0.5, %v326_v16 }
 0x20e   :  { %609 = verf.f32 %v337_v17 }
 0x20f   :  { %611 = verf.f32 %v336_v18 }
 0x218   :  { %v610_v19 = vpop.eup %609 }
 0x219   :  { %v612_v20 = vpop.eup %611  ;;  %v341_v22 = vadd.f32 1.0, %v610_v19 }
 0x21a   :  { %v340_v24 = vadd.f32 1.0, %v612_v20 }
 0x21b   :  { %v343_v25 = vmul.f32 %v341_v22, %v335_v21 }
 0x21c   :  { %v342_v26 = vmul.f32 %v340_v24, %v334_v23 }
 0x21e   :  { %v593_v27 = vpack.c.bf16 %v343_v25, %v342_v26 }
 0x220   :  { %594 = vmatpush3.bf16.msra.mxu1 %v593_v27 }
 0x223   :  { %534 = vmatmul.mubr.msk.f32.vlgmr.msra.gmra.mrb[2].mxu1 %vm349_vm4, %v32_v28 }
 0x2f6   :  { %v419_v30 = vpop.f32.mrb[2].mxu1 }
 0x2f7   :  { %v420_v31 = vadd.f32 %v419_v30, %v347_v29  ;;  %v535_v32 = vpop.f32.mrb[3].mxu1 }
 0x2f9   :  { %423 = vst [vmem:[%s801_s7] sm:$0x1f] %v420_v31 }

</bundles_post_ra>
